<compile_context>
chip_gen: v6e
topology: v6e:2x2x1
jax: 0.10.0
libtpu: 0.0.40
codegen_flags: <defaults>
</compile_context>

<pallas_src>
import math

import jax
import jax.numpy as jnp
from jax import lax
from jax.experimental import pallas as pl
from jax.experimental.pallas import tpu as pltpu

CONSTRAINT = 4.0   # generate_guass_vector default
SIGMA = 2.0        # generate_guass_vector default


def _sigmoid(x):
    return 1.0 / (1.0 + jnp.exp(-x))


def _recip(x):
    # EUP approximate reciprocal + one Newton refinement (~f32 accuracy).
    r = pl.reciprocal(x, approx=True)
    return r * (2.0 - x * r)


def _decoder_step_kernel(tok_ref, slen_ref,
                         emb_hbm, hid_ref, htil_ref, enc_ref, syn_ref,
                         w_gru_ref, b_gru_ref,
                         w_hfused_ref, w_ptv_ref,
                         w_attn_enc_ref, b_attn_ref, v_attn_ref,
                         w_comb_ref, b_comb_ref,
                         w_out_ref, b_out_ref,
                         out_ref,
                         emb_buf, copy_sem):
    H = hid_ref.shape[1]
    L = enc_ref.shape[0]
    O = b_out_ref.shape[1]

    # ---- embedding lookup: DMA exactly one row of the HBM table -------------
    tok = tok_ref[0]
    cp = pltpu.make_async_copy(emb_hbm.at[pl.ds(tok, 1), :], emb_buf, copy_sem)
    cp.start()

    # ---- step-invariant encoder projection (independent of h_t, issue early)
    enc_proj = jnp.dot(enc_ref[...], w_attn_enc_ref[...],
                       preferred_element_type=jnp.float32)              # (L, H)

    cp.wait()
    emb = emb_buf[...]                                                  # (1, H)
    # TODO(synk): nn.Dropout(p=0.1) on the embedding is identity here (eval mode).

    # ---- GRU cell, one fused MXU push: [x, h_prev] @ blockdiag(W_ih^T,W_hh^T)
    xh = jnp.concatenate([emb, htil_ref[...], hid_ref[...]], axis=1)    # (1, 3H)
    gates = jnp.dot(xh, w_gru_ref[...],
                    preferred_element_type=jnp.float32) + b_gru_ref[...]  # (1, 6H)
    gi = gates[:, 0:3 * H]
    gh = gates[:, 3 * H:6 * H]
    r = _sigmoid(gi[:, 0:H] + gh[:, 0:H])
    z = _sigmoid(gi[:, H:2 * H] + gh[:, H:2 * H])
    n = jnp.tanh(gi[:, 2 * H:3 * H] + r * gh[:, 2 * H:3 * H])
    h_prev = hid_ref[...]
    h_t = (1.0 - z) * n + z * h_prev                                    # (1, H)

    # ---- fused h_t projections: [ p_t dense | attention h-half ] ------------
    hproj = jnp.dot(h_t, w_hfused_ref[...],
                    preferred_element_type=jnp.float32)                 # (1, 2H)
    pt_h = jnp.tanh(hproj[:, 0:H])                                      # (1, H)
    attn_h = hproj[:, H:2 * H]                                          # (1, H)

    # ---- p_t = round(s_length * sigmoid(v_pt . pt_h)), clamped to [0, L-1] --
    pt_s = _sigmoid(jnp.sum(pt_h * w_ptv_ref[...], axis=1, keepdims=True))  # (1, 1)
    # round-to-nearest via floor(x + 0.5) (differs from banker's rounding only
    # at exact .5 ties).
    p_t = jnp.floor(slen_ref[0] * pt_s + 0.5).astype(jnp.int32)
    p_t = jnp.clip(p_t, 0, L - 1)                                       # (1, 1)

    # ---- syntax gaussian vector from row p_t of syntax_matrix ---------------
    # L is small (max_length); a masked sublane reduce is cheap and robust.
    syn_rows = lax.broadcasted_iota(jnp.int32, syn_ref.shape, 0)
    d = jnp.sum(jnp.where(syn_rows == p_t, syn_ref[...], 0.0),
                axis=0, keepdims=True)                                  # (1, L)
    g = jnp.where(d > CONSTRAINT, 0.0,
                  jnp.exp(-(d * d) * (1.0 / (2.0 * SIGMA * SIGMA))))    # (1, L)

    # ---- attention (concat score), lane-dense (1, L) scores -----------------
    energy = jnp.maximum(enc_proj + attn_h + b_attn_ref[...], 0.0)      # (L, H)
    scores = lax.dot_general(v_attn_ref[...], energy,
                             (((1,), (1,)), ((), ())),
                             preferred_element_type=jnp.float32)        # (1, L)
    m = jnp.max(scores, axis=1, keepdims=True)
    ex = jnp.exp(scores - m)
    attn_soft = ex * _recip(jnp.sum(ex, axis=1, keepdims=True))         # softmax over T
    attn_w = attn_soft * g
    attn_w = attn_w * _recip(jnp.sum(attn_w, axis=1, keepdims=True) + 1e-30)

    # ---- context, attn_combine, output head (log-softmax) -------------------
    context = jnp.dot(attn_w, enc_ref[...],
                      preferred_element_type=jnp.float32)               # (1, H)
    comb = jnp.concatenate([context, h_t], axis=1)                      # (1, 2H)
    h_tilde = jnp.tanh(jnp.dot(comb, w_comb_ref[...],
                               preferred_element_type=jnp.float32)
                       + b_comb_ref[...])                               # (1, H)
    logits = jnp.dot(h_tilde, w_out_ref[...],
                     preferred_element_type=jnp.float32) + b_out_ref[...]  # (1, O)
    lm = logits - jnp.max(logits, axis=1, keepdims=True)
    logp = lm - jnp.log(jnp.sum(jnp.exp(lm), axis=1, keepdims=True))

    # ---- single lane-dense packed store --------------------------------------
    pad = out_ref.shape[1] - (O + 2 * H + L)
    pieces = [logp, h_t, h_tilde, attn_w]
    if pad > 0:
        pieces.append(jnp.zeros((1, pad), jnp.float32))
    out_ref[...] = jnp.concatenate(pieces, axis=1)


def prepare_params(raw):
    """One-time weight re-layout (done on the host, outside the kernel):
       pre-transposed (in, out) weights, fused GRU block-diagonal weight,
       fused [p_t-dense | attn-h] projection, split attention weight."""
    H = raw["w_hh"].shape[1]
    w_gru = jnp.zeros((3 * H, 6 * H), jnp.float32)
    w_gru = w_gru.at[:2 * H, :3 * H].set(raw["w_ih"].T)       # gi block
    w_gru = w_gru.at[2 * H:, 3 * H:].set(raw["w_hh"].T)       # gh block
    return dict(
        embedding=raw["embedding"],                           # (V, H) stays in HBM
        w_gru=w_gru,                                          # (3H, 6H)
        b_gru=jnp.concatenate([raw["b_ih"], raw["b_hh"]], axis=1),   # (1, 6H)
        w_hfused=jnp.concatenate([raw["w_pt_dense"].T,
                                  raw["w_attn"][:, :H].T], axis=1),  # (H, 2H)
        w_pt_dot=raw["w_pt_dot"],                             # (1, H) row
        w_attn_enc=raw["w_attn"][:, H:].T,                    # (H, H)
        b_attn=raw["b_attn"],                                 # (1, H)
        v_attn=raw["v_attn"],                                 # (1, H)
        w_comb=raw["w_comb"].T,                               # (2H, H)
        b_comb=raw["b_comb"],                                 # (1, H)
        w_out=raw["w_out"].T,                                 # (H, O)
        b_out=raw["b_out"],                                   # (1, O)
    )


def syntax_attn_decoder_step(fp, token, hidden, encoder_outputs,
                             h_t_tilde, s_length, syntax_matrix):
    """One fused decode step.  Shapes follow the PyTorch module:
       token: scalar int; hidden, h_t_tilde: (1,1,H); encoder_outputs: (L,H);
       syntax_matrix: (L,L); s_length: python float.
       Returns (log_probs (1,O), hidden (1,1,H), h_t_tilde (1,1,H), attn (1,L))."""
    H = fp["b_attn"].shape[1]
    L = encoder_outputs.shape[0]
    O = fp["b_out"].shape[1]
    V = fp["embedding"].shape[0]
    total = O + 2 * H + L
    P = max(128, ((total + 127) // 128) * 128)    # packed lane-dense output width

    tok = jnp.clip(jnp.asarray(token, jnp.int32), 0, V - 1).reshape((1,))
    slen = jnp.asarray(s_length, jnp.float32).reshape((1,))
    hid2d = hidden.reshape(1, H)
    htil2d = h_t_tilde.reshape(1, H)

    smem = pl.BlockSpec(memory_space=pltpu.MemorySpace.SMEM)
    vmem = pl.BlockSpec(memory_space=pltpu.MemorySpace.VMEM)
    hbm = pl.BlockSpec(memory_space=pl.ANY)

    packed = pl.pallas_call(
        _decoder_step_kernel,
        out_shape=jax.ShapeDtypeStruct((1, P), jnp.float32),
        in_specs=[smem, smem, hbm] + [vmem] * 15,
        out_specs=vmem,
        scratch_shapes=[pltpu.VMEM((1, H), jnp.float32),
                        pltpu.SemaphoreType.DMA(())],
    )(tok, slen,
      fp["embedding"], hid2d, htil2d, encoder_outputs, syntax_matrix,
      fp["w_gru"], fp["b_gru"],
      fp["w_hfused"], fp["w_pt_dot"],
      fp["w_attn_enc"], fp["b_attn"], fp["v_attn"],
      fp["w_comb"], fp["b_comb"],
      fp["w_out"], fp["b_out"])

    logp = packed[:, :O]
    h_new = packed[:, O:O + H]
    h_tilde = packed[:, O + H:O + 2 * H]
    attn_w = packed[:, O + 2 * H:O + 2 * H + L]
    return logp, h_new.reshape(1, 1, H), h_tilde.reshape(1, 1, H), attn_w


def _reference(params, token, hidden, encoder_outputs, h_t_tilde,
               s_length, syntax_matrix):
    """Pure-JAX mirror of the PyTorch forward (eval mode), raw weights."""
    hp = lax.Precision.HIGHEST
    H = params["w_hh"].shape[1]
    L = encoder_outputs.shape[0]
    emb = params["embedding"][token].reshape(1, H)
    x = jnp.concatenate([emb, h_t_tilde.reshape(1, H)], axis=1)
    h_prev = hidden.reshape(1, H)
    gi = jnp.dot(x, params["w_ih"].T, precision=hp) + params["b_ih"]
    gh = jnp.dot(h_prev, params["w_hh"].T, precision=hp) + params["b_hh"]
    r = _sigmoid(gi[:, :H] + gh[:, :H])
    z = _sigmoid(gi[:, H:2 * H] + gh[:, H:2 * H])
    n = jnp.tanh(gi[:, 2 * H:] + r * gh[:, 2 * H:])
    h_t = (1.0 - z) * n + z * h_prev
    pt_s = _sigmoid(
        jnp.dot(jnp.tanh(jnp.dot(h_t, params["w_pt_dense"].T, precision=hp)),
                params["w_pt_dot"].T, precision=hp))[0, 0]
    p_t = jnp.clip(jnp.floor(s_length * pt_s + 0.5).astype(jnp.int32), 0, L - 1)
    d = syntax_matrix[p_t]
    g = jnp.where(d > CONSTRAINT, 0.0, jnp.exp(-(d * d) / (2.0 * SIGMA ** 2)))
    hcat = jnp.concatenate([jnp.broadcast_to(h_t, (L, H)), encoder_outputs], axis=1)
    energy = jax.nn.relu(jnp.dot(hcat, params["w_attn"].T, precision=hp)
                         + params["b_attn"])
    scores = jnp.dot(energy, params["v_attn"][0], precision=hp)          # (L,)
    aw = jax.nn.softmax(scores, axis=0) * g
    aw = (aw / jnp.sum(aw)).reshape(1, L)
    context = jnp.dot(aw, encoder_outputs, precision=hp)                 # (1, H)
    comb = jnp.concatenate([context, h_t], axis=1)
    h_tilde = jnp.tanh(jnp.dot(comb, params["w_comb"].T, precision=hp)
                       + params["b_comb"])
    logits = jnp.dot(h_tilde, params["w_out"].T, precision=hp) + params["b_out"]
    out = jax.nn.log_softmax(logits, axis=-1)
    return out, h_t.reshape(1, 1, H), h_tilde.reshape(1, 1, H), aw


if __name__ == "__main__":
    H = 32          # hidden_size
    O = 50          # output_size (vocab)
    L = 8           # max_length == encoder timesteps
    S_LENGTH = 6.0  # source sentence length

    key = jax.random.PRNGKey(0)
    ks = jax.random.split(key, 17)

    def u(k, shape, fan_in):
        s = 1.0 / math.sqrt(fan_in)
        return jax.random.uniform(k, shape, jnp.float32, minval=-s, maxval=s)

    # Raw weights in native PyTorch (out_features, in_features) layout;
    # biases stored as (1, out_features) rows.
    raw_params = dict(
        embedding=jax.random.normal(ks[0], (O, H), jnp.float32),
        w_ih=u(ks[1], (3 * H, 2 * H), H),
        b_ih=u(ks[2], (1, 3 * H), H),
        w_hh=u(ks[3], (3 * H, H), H),
        b_hh=u(ks[4], (1, 3 * H), H),
        w_pt_dense=u(ks[5], (H, H), H),
        w_pt_dot=u(ks[6], (1, H), H),
        w_attn=u(ks[7], (H, 2 * H), 2 * H),
        b_attn=u(ks[8], (1, H), 2 * H),
        v_attn=u(ks[9], (1, H), H),
        w_comb=u(ks[10], (H, 2 * H), 2 * H),
        b_comb=u(ks[11], (1, H), 2 * H),
        w_out=u(ks[12], (O, H), H),
        b_out=u(ks[13], (1, O), H),
    )
    fused_params = prepare_params(raw_params)   # one-time host re-layout

    token = 7
    hidden = jnp.zeros((1, 1, H), jnp.float32)
    h_t_tilde = 0.1 * jax.random.normal(ks[14], (1, 1, H), jnp.float32)
    encoder_outputs = jax.random.normal(ks[15], (L, H), jnp.float32)
    syntax_matrix = jax.random.randint(ks[16], (L, L), 0, 8).astype(jnp.float32)

    out, hid_new, htil_new, attn_w = syntax_attn_decoder_step(
        fused_params, token, hidden, encoder_outputs, h_t_tilde,
        S_LENGTH, syntax_matrix)
    out = jax.block_until_ready(out)

    ro, rh, rt, ra = _reference(raw_params, token, hidden, encoder_outputs,
                                h_t_tilde, S_LENGTH, syntax_matrix)

    assert out.shape == (1, O) and hid_new.shape == (1, 1, H)
    assert htil_new.shape == (1, 1, H) and attn_w.shape == (1, L)
    assert jnp.allclose(out, ro, atol=1e-4, rtol=1e-4), (out, ro)
    assert jnp.allclose(hid_new, rh, atol=1e-4, rtol=1e-4)
    assert jnp.allclose(htil_new, rt, atol=1e-4, rtol=1e-4)
    assert jnp.allclose(attn_w, ra, atol=1e-4, rtol=1e-4), (attn_w, ra)
    assert jnp.allclose(jnp.sum(attn_w), 1.0, atol=1e-4)

    print("KERNEL_OK")
</pallas_src>

<mosaic_0001>
module attributes {stable_mosaic.version = 11 : i64} {
  func.func @_decoder_step_kernel(%arg0: memref<1xi32, #tpu.memory_space<smem>>, %arg1: memref<1xf32, #tpu.memory_space<smem>>, %arg2: memref<50x32xf32, #tpu.memory_space<any>>, %arg3: memref<1x32xf32, #tpu.memory_space<vmem>>, %arg4: memref<1x32xf32, #tpu.memory_space<vmem>>, %arg5: memref<8x32xf32, #tpu.memory_space<vmem>>, %arg6: memref<8x8xf32, #tpu.memory_space<vmem>>, %arg7: memref<96x192xf32, #tpu.memory_space<vmem>>, %arg8: memref<1x192xf32, #tpu.memory_space<vmem>>, %arg9: memref<32x64xf32, #tpu.memory_space<vmem>>, %arg10: memref<1x32xf32, #tpu.memory_space<vmem>>, %arg11: memref<32x32xf32, #tpu.memory_space<vmem>>, %arg12: memref<1x32xf32, #tpu.memory_space<vmem>>, %arg13: memref<1x32xf32, #tpu.memory_space<vmem>>, %arg14: memref<64x32xf32, #tpu.memory_space<vmem>>, %arg15: memref<1x32xf32, #tpu.memory_space<vmem>>, %arg16: memref<32x50xf32, #tpu.memory_space<vmem>>, %arg17: memref<1x50xf32, #tpu.memory_space<vmem>>, %arg18: memref<1x128xf32, #tpu.memory_space<vmem>>, %arg19: memref<1x32xf32, #tpu.memory_space<vmem>>, %arg20: memref<!tpu.dma_semaphore, #tpu.memory_space<semaphore_mem>>) attributes {dimension_semantics = [], scalar_prefetch = 0 : i64, scratch_operands = 2 : i64, tpu.core_type = #tpu.core_type<tc>} {
    %c0 = arith.constant 0 : index
    %0 = memref.load %arg0[%c0] : memref<1xi32, #tpu.memory_space<smem>>
    %c0_i32 = arith.constant 0 : i32
    %1 = tpu.memref_slice %arg2[%0, %c0_i32] : memref<50x32xf32, #tpu.memory_space<any>> -> memref<1x32xf32, #tpu.memory_space<any>>
    tpu.enqueue_dma source(%1 : memref<1x32xf32, #tpu.memory_space<any>>) target(%arg19 : memref<1x32xf32, #tpu.memory_space<vmem>>) target_semaphore(%arg20 : memref<!tpu.dma_semaphore, #tpu.memory_space<semaphore_mem>>)
    %c0_0 = arith.constant 0 : index
    %c0_1 = arith.constant 0 : index
    %2 = vector.load %arg5[%c0_0, %c0_1] : memref<8x32xf32, #tpu.memory_space<vmem>>, vector<8x32xf32>
    %c0_2 = arith.constant 0 : index
    %c0_3 = arith.constant 0 : index
    %3 = vector.load %arg11[%c0_2, %c0_3] : memref<32x32xf32, #tpu.memory_space<vmem>>, vector<32x32xf32>
    %cst = arith.constant dense<0.000000e+00> : vector<8x32xf32>
    %4 = tpu.matmul %2, %3, %cst {dimension_numbers = #tpu.dot_dimension_numbers<[1], [0], [0], [1], [0, 0, 1, 1], [], []>} : vector<8x32xf32>, vector<32x32xf32>, vector<8x32xf32> -> vector<8x32xf32>
    %c0_i32_4 = arith.constant 0 : i32
    %5 = tpu.memref_slice %arg2[%0, %c0_i32_4] : memref<50x32xf32, #tpu.memory_space<any>> -> memref<1x32xf32, #tpu.memory_space<any>>
    tpu.wait_dma2 semaphore(%arg20 : memref<!tpu.dma_semaphore, #tpu.memory_space<semaphore_mem>>) src(%5 : memref<1x32xf32, #tpu.memory_space<any>>) dst(%arg19 : memref<1x32xf32, #tpu.memory_space<vmem>>)
    %c0_5 = arith.constant 0 : index
    %c0_6 = arith.constant 0 : index
    %6 = vector.load %arg19[%c0_5, %c0_6] : memref<1x32xf32, #tpu.memory_space<vmem>>, vector<1x32xf32>
    %c0_7 = arith.constant 0 : index
    %c0_8 = arith.constant 0 : index
    %7 = vector.load %arg4[%c0_7, %c0_8] : memref<1x32xf32, #tpu.memory_space<vmem>>, vector<1x32xf32>
    %c0_9 = arith.constant 0 : index
    %c0_10 = arith.constant 0 : index
    %8 = vector.load %arg3[%c0_9, %c0_10] : memref<1x32xf32, #tpu.memory_space<vmem>>, vector<1x32xf32>
    %9 = tpu.concatenate %6, %7, %8 in 1 : vector<1x32xf32>, vector<1x32xf32>, vector<1x32xf32> -> vector<1x96xf32>
    %c0_11 = arith.constant 0 : index
    %c0_12 = arith.constant 0 : index
    %10 = vector.load %arg7[%c0_11, %c0_12] : memref<96x192xf32, #tpu.memory_space<vmem>>, vector<96x192xf32>
    %cst_13 = arith.constant dense<0.000000e+00> : vector<1x192xf32>
    %11 = tpu.matmul %9, %10, %cst_13 {dimension_numbers = #tpu.dot_dimension_numbers<[1], [0], [0], [1], [0, 0, 1, 1], [], []>} : vector<1x96xf32>, vector<96x192xf32>, vector<1x192xf32> -> vector<1x192xf32>
    %c0_14 = arith.constant 0 : index
    %c0_15 = arith.constant 0 : index
    %12 = vector.load %arg8[%c0_14, %c0_15] : memref<1x192xf32, #tpu.memory_space<vmem>>, vector<1x192xf32>
    %13 = arith.addf %11, %12 : vector<1x192xf32>
    %14 = vector.extract_strided_slice %13 {offsets = [0, 0], sizes = [1, 96], strides = [1, 1]} : vector<1x192xf32> to vector<1x96xf32>
    %15 = vector.extract_strided_slice %13 {offsets = [0, 96], sizes = [1, 96], strides = [1, 1]} : vector<1x192xf32> to vector<1x96xf32>
    %16 = vector.extract_strided_slice %14 {offsets = [0, 0], sizes = [1, 32], strides = [1, 1]} : vector<1x96xf32> to vector<1x32xf32>
    %17 = vector.extract_strided_slice %15 {offsets = [0, 0], sizes = [1, 32], strides = [1, 1]} : vector<1x96xf32> to vector<1x32xf32>
    %18 = arith.addf %16, %17 : vector<1x32xf32>
    %cst_16 = arith.constant 0.000000e+00 : f32
    %19 = vector.broadcast %cst_16 : f32 to vector<1x32xf32>
    %20 = arith.subf %19, %18 : vector<1x32xf32>
    %21 = math.exp %20 : vector<1x32xf32>
    %cst_17 = arith.constant 1.000000e+00 : f32
    %22 = vector.broadcast %cst_17 : f32 to vector<1x32xf32>
    %23 = arith.addf %22, %21 : vector<1x32xf32>
    %cst_18 = arith.constant 1.000000e+00 : f32
    %24 = vector.broadcast %cst_18 : f32 to vector<1x32xf32>
    %25 = arith.divf %24, %23 : vector<1x32xf32>
    %26 = vector.extract_strided_slice %14 {offsets = [0, 32], sizes = [1, 32], strides = [1, 1]} : vector<1x96xf32> to vector<1x32xf32>
    %27 = vector.extract_strided_slice %15 {offsets = [0, 32], sizes = [1, 32], strides = [1, 1]} : vector<1x96xf32> to vector<1x32xf32>
    %28 = arith.addf %26, %27 : vector<1x32xf32>
    %cst_19 = arith.constant 0.000000e+00 : f32
    %29 = vector.broadcast %cst_19 : f32 to vector<1x32xf32>
    %30 = arith.subf %29, %28 : vector<1x32xf32>
    %31 = math.exp %30 : vector<1x32xf32>
    %cst_20 = arith.constant 1.000000e+00 : f32
    %32 = vector.broadcast %cst_20 : f32 to vector<1x32xf32>
    %33 = arith.addf %32, %31 : vector<1x32xf32>
    %cst_21 = arith.constant 1.000000e+00 : f32
    %34 = vector.broadcast %cst_21 : f32 to vector<1x32xf32>
    %35 = arith.divf %34, %33 : vector<1x32xf32>
    %36 = vector.extract_strided_slice %14 {offsets = [0, 64], sizes = [1, 32], strides = [1, 1]} : vector<1x96xf32> to vector<1x32xf32>
    %37 = vector.extract_strided_slice %15 {offsets = [0, 64], sizes = [1, 32], strides = [1, 1]} : vector<1x96xf32> to vector<1x32xf32>
    %38 = arith.mulf %25, %37 : vector<1x32xf32>
    %39 = arith.addf %36, %38 : vector<1x32xf32>
    %40 = math.tanh %39 : vector<1x32xf32>
    %c0_22 = arith.constant 0 : index
    %c0_23 = arith.constant 0 : index
    %41 = vector.load %arg3[%c0_22, %c0_23] : memref<1x32xf32, #tpu.memory_space<vmem>>, vector<1x32xf32>
    %cst_24 = arith.constant 1.000000e+00 : f32
    %42 = vector.broadcast %cst_24 : f32 to vector<1x32xf32>
    %43 = arith.subf %42, %35 : vector<1x32xf32>
    %44 = arith.mulf %43, %40 : vector<1x32xf32>
    %45 = arith.mulf %35, %41 : vector<1x32xf32>
    %46 = arith.addf %44, %45 : vector<1x32xf32>
    %c0_25 = arith.constant 0 : index
    %c0_26 = arith.constant 0 : index
    %47 = vector.load %arg9[%c0_25, %c0_26] : memref<32x64xf32, #tpu.memory_space<vmem>>, vector<32x64xf32>
    %cst_27 = arith.constant dense<0.000000e+00> : vector<1x64xf32>
    %48 = tpu.matmul %46, %47, %cst_27 {dimension_numbers = #tpu.dot_dimension_numbers<[1], [0], [0], [1], [0, 0, 1, 1], [], []>} : vector<1x32xf32>, vector<32x64xf32>, vector<1x64xf32> -> vector<1x64xf32>
    %49 = vector.extract_strided_slice %48 {offsets = [0, 0], sizes = [1, 32], strides = [1, 1]} : vector<1x64xf32> to vector<1x32xf32>
    %50 = math.tanh %49 : vector<1x32xf32>
    %51 = vector.extract_strided_slice %48 {offsets = [0, 32], sizes = [1, 32], strides = [1, 1]} : vector<1x64xf32> to vector<1x32xf32>
    %c0_28 = arith.constant 0 : index
    %c0_29 = arith.constant 0 : index
    %52 = vector.load %arg10[%c0_28, %c0_29] : memref<1x32xf32, #tpu.memory_space<vmem>>, vector<1x32xf32>
    %53 = arith.mulf %50, %52 : vector<1x32xf32>
    %cst_30 = arith.constant dense<0.000000e+00> : vector<1xf32>
    %54 = vector.multi_reduction <add>, %53, %cst_30 [1] : vector<1x32xf32> to vector<1xf32>
    %55 = vector.shape_cast %54 : vector<1xf32> to vector<1x1xf32>
    %cst_31 = arith.constant 0.000000e+00 : f32
    %56 = vector.broadcast %cst_31 : f32 to vector<1x1xf32>
    %57 = arith.subf %56, %55 : vector<1x1xf32>
    %58 = math.exp %57 : vector<1x1xf32>
    %cst_32 = arith.constant 1.000000e+00 : f32
    %59 = vector.broadcast %cst_32 : f32 to vector<1x1xf32>
    %60 = arith.addf %59, %58 : vector<1x1xf32>
    %cst_33 = arith.constant 1.000000e+00 : f32
    %61 = vector.broadcast %cst_33 : f32 to vector<1x1xf32>
    %62 = arith.divf %61, %60 : vector<1x1xf32>
    %c0_34 = arith.constant 0 : index
    %63 = memref.load %arg1[%c0_34] : memref<1xf32, #tpu.memory_space<smem>>
    %64 = vector.broadcast %63 : f32 to vector<1x1xf32>
    %65 = arith.mulf %64, %62 : vector<1x1xf32>
    %cst_35 = arith.constant 5.000000e-01 : f32
    %66 = vector.broadcast %cst_35 : f32 to vector<1x1xf32>
    %67 = arith.addf %65, %66 : vector<1x1xf32>
    %68 = math.floor %67 : vector<1x1xf32>
    %69 = arith.fptosi %68 : vector<1x1xf32> to vector<1x1xi32>
    %c0_i32_36 = arith.constant 0 : i32
    %c7_i32 = arith.constant 7 : i32
    %70 = vector.broadcast %c0_i32_36 : i32 to vector<1x1xi32>
    %71 = arith.maxsi %70, %69 : vector<1x1xi32>
    %72 = vector.broadcast %c7_i32 : i32 to vector<1x1xi32>
    %73 = arith.minsi %72, %71 : vector<1x1xi32>
    %74 = tpu.iota {dimensions = array<i32: 0>} : vector<8x8xi32>
    %75 = vector.broadcast %73 : vector<1x1xi32> to vector<8x8xi32>
    %76 = arith.cmpi eq, %74, %75 : vector<8x8xi32>
    %c0_37 = arith.constant 0 : index
    %c0_38 = arith.constant 0 : index
    %77 = vector.load %arg6[%c0_37, %c0_38] : memref<8x8xf32, #tpu.memory_space<vmem>>, vector<8x8xf32>
    %cst_39 = arith.constant 0.000000e+00 : f32
    %78 = vector.broadcast %cst_39 : f32 to vector<8x8xf32>
    %79 = arith.select %76, %77, %78 : vector<8x8xi1>, vector<8x8xf32>
    %cst_40 = arith.constant dense<0.000000e+00> : vector<8xf32>
    %80 = vector.multi_reduction <add>, %79, %cst_40 [0] : vector<8x8xf32> to vector<8xf32>
    %81 = vector.shape_cast %80 : vector<8xf32> to vector<1x8xf32>
    %cst_41 = arith.constant 4.000000e+00 : f32
    %82 = vector.broadcast %cst_41 : f32 to vector<1x8xf32>
    %83 = arith.cmpf ogt, %81, %82 : vector<1x8xf32>
    %84 = arith.mulf %81, %81 : vector<1x8xf32>
    %cst_42 = arith.constant 0.000000e+00 : f32
    %85 = vector.broadcast %cst_42 : f32 to vector<1x8xf32>
    %86 = arith.subf %85, %84 : vector<1x8xf32>
    %cst_43 = arith.constant 1.250000e-01 : f32
    %87 = vector.broadcast %cst_43 : f32 to vector<1x8xf32>
    %88 = arith.mulf %86, %87 : vector<1x8xf32>
    %89 = math.exp %88 : vector<1x8xf32>
    %cst_44 = arith.constant 0.000000e+00 : f32
    %90 = vector.broadcast %cst_44 : f32 to vector<1x8xf32>
    %91 = arith.select %83, %90, %89 : vector<1x8xi1>, vector<1x8xf32>
    %92 = vector.broadcast %51 : vector<1x32xf32> to vector<8x32xf32>
    %93 = arith.addf %4, %92 : vector<8x32xf32>
    %c0_45 = arith.constant 0 : index
    %c0_46 = arith.constant 0 : index
    %94 = vector.load %arg12[%c0_45, %c0_46] : memref<1x32xf32, #tpu.memory_space<vmem>>, vector<1x32xf32>
    %95 = vector.broadcast %94 : vector<1x32xf32> to vector<8x32xf32>
    %96 = arith.addf %93, %95 : vector<8x32xf32>
    %cst_47 = arith.constant 0.000000e+00 : f32
    %97 = vector.broadcast %cst_47 : f32 to vector<8x32xf32>
    %98 = arith.maximumf %96, %97 : vector<8x32xf32>
    %c0_48 = arith.constant 0 : index
    %c0_49 = arith.constant 0 : index
    %99 = vector.load %arg13[%c0_48, %c0_49] : memref<1x32xf32, #tpu.memory_space<vmem>>, vector<1x32xf32>
    %cst_50 = arith.constant dense<0.000000e+00> : vector<1x8xf32>
    %100 = tpu.matmul %99, %98, %cst_50 {dimension_numbers = #tpu.dot_dimension_numbers<[1], [1], [0], [0], [0, 0, 1, 0], [], []>} : vector<1x32xf32>, vector<8x32xf32>, vector<1x8xf32> -> vector<1x8xf32>
    %cst_51 = arith.constant dense<0xFF800000> : vector<1xf32>
    %101 = vector.multi_reduction <maximumf>, %100, %cst_51 [1] : vector<1x8xf32> to vector<1xf32>
    %102 = vector.shape_cast %101 : vector<1xf32> to vector<1x1xf32>
    %103 = vector.broadcast %102 : vector<1x1xf32> to vector<1x8xf32>
    %104 = arith.subf %100, %103 : vector<1x8xf32>
    %105 = math.exp %104 : vector<1x8xf32>
    %cst_52 = arith.constant dense<0.000000e+00> : vector<1xf32>
    %106 = vector.multi_reduction <add>, %105, %cst_52 [1] : vector<1x8xf32> to vector<1xf32>
    %107 = vector.shape_cast %106 : vector<1xf32> to vector<1x1xf32>
    %108 = tpu.reciprocal %107 {approx = true} : vector<1x1xf32> -> vector<1x1xf32>
    %109 = arith.mulf %107, %108 : vector<1x1xf32>
    %cst_53 = arith.constant 2.000000e+00 : f32
    %110 = vector.broadcast %cst_53 : f32 to vector<1x1xf32>
    %111 = arith.subf %110, %109 : vector<1x1xf32>
    %112 = arith.mulf %108, %111 : vector<1x1xf32>
    %113 = vector.broadcast %112 : vector<1x1xf32> to vector<1x8xf32>
    %114 = arith.mulf %105, %113 : vector<1x8xf32>
    %115 = arith.mulf %114, %91 : vector<1x8xf32>
    %cst_54 = arith.constant dense<0.000000e+00> : vector<1xf32>
    %116 = vector.multi_reduction <add>, %115, %cst_54 [1] : vector<1x8xf32> to vector<1xf32>
    %117 = vector.shape_cast %116 : vector<1xf32> to vector<1x1xf32>
    %cst_55 = arith.constant 1.000000e-30 : f32
    %118 = vector.broadcast %cst_55 : f32 to vector<1x1xf32>
    %119 = arith.addf %117, %118 : vector<1x1xf32>
    %120 = tpu.reciprocal %119 {approx = true} : vector<1x1xf32> -> vector<1x1xf32>
    %121 = arith.mulf %119, %120 : vector<1x1xf32>
    %cst_56 = arith.constant 2.000000e+00 : f32
    %122 = vector.broadcast %cst_56 : f32 to vector<1x1xf32>
    %123 = arith.subf %122, %121 : vector<1x1xf32>
    %124 = arith.mulf %120, %123 : vector<1x1xf32>
    %125 = vector.broadcast %124 : vector<1x1xf32> to vector<1x8xf32>
    %126 = arith.mulf %115, %125 : vector<1x8xf32>
    %c0_57 = arith.constant 0 : index
    %c0_58 = arith.constant 0 : index
    %127 = vector.load %arg5[%c0_57, %c0_58] : memref<8x32xf32, #tpu.memory_space<vmem>>, vector<8x32xf32>
    %cst_59 = arith.constant dense<0.000000e+00> : vector<1x32xf32>
    %128 = tpu.matmul %126, %127, %cst_59 {dimension_numbers = #tpu.dot_dimension_numbers<[1], [0], [0], [1], [0, 0, 1, 1], [], []>} : vector<1x8xf32>, vector<8x32xf32>, vector<1x32xf32> -> vector<1x32xf32>
    %129 = tpu.concatenate %128, %46 in 1 : vector<1x32xf32>, vector<1x32xf32> -> vector<1x64xf32>
    %c0_60 = arith.constant 0 : index
    %c0_61 = arith.constant 0 : index
    %130 = vector.load %arg14[%c0_60, %c0_61] : memref<64x32xf32, #tpu.memory_space<vmem>>, vector<64x32xf32>
    %cst_62 = arith.constant dense<0.000000e+00> : vector<1x32xf32>
    %131 = tpu.matmul %129, %130, %cst_62 {dimension_numbers = #tpu.dot_dimension_numbers<[1], [0], [0], [1], [0, 0, 1, 1], [], []>} : vector<1x64xf32>, vector<64x32xf32>, vector<1x32xf32> -> vector<1x32xf32>
    %c0_63 = arith.constant 0 : index
    %c0_64 = arith.constant 0 : index
    %132 = vector.load %arg15[%c0_63, %c0_64] : memref<1x32xf32, #tpu.memory_space<vmem>>, vector<1x32xf32>
    %133 = arith.addf %131, %132 : vector<1x32xf32>
    %134 = math.tanh %133 : vector<1x32xf32>
    %c0_65 = arith.constant 0 : index
    %c0_66 = arith.constant 0 : index
    %135 = vector.load %arg16[%c0_65, %c0_66] : memref<32x50xf32, #tpu.memory_space<vmem>>, vector<32x50xf32>
    %cst_67 = arith.constant dense<0.000000e+00> : vector<1x50xf32>
    %136 = tpu.matmul %134, %135, %cst_67 {dimension_numbers = #tpu.dot_dimension_numbers<[1], [0], [0], [1], [0, 0, 1, 1], [], []>} : vector<1x32xf32>, vector<32x50xf32>, vector<1x50xf32> -> vector<1x50xf32>
    %c0_68 = arith.constant 0 : index
    %c0_69 = arith.constant 0 : index
    %137 = vector.load %arg17[%c0_68, %c0_69] : memref<1x50xf32, #tpu.memory_space<vmem>>, vector<1x50xf32>
    %138 = arith.addf %136, %137 : vector<1x50xf32>
    %cst_70 = arith.constant dense<0xFF800000> : vector<1xf32>
    %139 = vector.multi_reduction <maximumf>, %138, %cst_70 [1] : vector<1x50xf32> to vector<1xf32>
    %140 = vector.shape_cast %139 : vector<1xf32> to vector<1x1xf32>
    %141 = vector.broadcast %140 : vector<1x1xf32> to vector<1x50xf32>
    %142 = arith.subf %138, %141 : vector<1x50xf32>
    %143 = math.exp %142 : vector<1x50xf32>
    %cst_71 = arith.constant dense<0.000000e+00> : vector<1xf32>
    %144 = vector.multi_reduction <add>, %143, %cst_71 [1] : vector<1x50xf32> to vector<1xf32>
    %145 = vector.shape_cast %144 : vector<1xf32> to vector<1x1xf32>
    %146 = math.log %145 : vector<1x1xf32>
    %147 = vector.broadcast %146 : vector<1x1xf32> to vector<1x50xf32>
    %148 = arith.subf %142, %147 : vector<1x50xf32>
    %cst_72 = arith.constant 0.000000e+00 : f32
    %149 = vector.broadcast %cst_72 : f32 to vector<1x6xf32>
    %150 = tpu.concatenate %148, %46, %134, %126, %149 in 1 : vector<1x50xf32>, vector<1x32xf32>, vector<1x32xf32>, vector<1x8xf32>, vector<1x6xf32> -> vector<1x128xf32>
    %c0_73 = arith.constant 0 : index
    %c0_74 = arith.constant 0 : index
    %151 = vector.load %arg18[%c0_73, %c0_74] : memref<1x128xf32, #tpu.memory_space<vmem>>, vector<1x128xf32>
    tpu.vector_store %arg18[%c0_73, %c0_74], %150 {strides = array<i32>} : memref<1x128xf32, #tpu.memory_space<vmem>>, vector<1x128xf32>,
    return
  }
}

</mosaic_0001>

<bundles_post_ra>
// kernel: tpu_custom_call.1
= control target key start
LH: loop header
LB: loop body
LE: loop exit
PB: predicated region body
PF: predicated region fallthrough
CT: control target
= control target key end

     0   :  { %s1616_s0 = inlined_call_operand.<no memory space> [shape: s32[1], index: 0, kind: input, shape index: {}]   ;;  %s1617_s1 = inlined_call_operand.<no memory space> [shape: f32[1], index: 1, kind: input, shape index: {}]   ;;  %s1618_s2 = inlined_call_operand.vmem [shape: f32[50,32], index: 2, kind: input, shape index: {}]   ;;  %s1619_s3 = inlined_call_operand.vmem [shape: f32[1,32], index: 3, kind: input, shape index: {}]   ;;  %s1620_s4 = inlined_call_operand.vmem [shape: f32[1,32], index: 4, kind: input, shape index: {}]   ;;  %s1621_s5 = inlined_call_operand.hbm [shape: f32[8,32], index: 5, kind: input, shape index: {}]   ;;  %s1622_s6 = inlined_call_operand.hbm [shape: f32[8,8], index: 6, kind: input, shape index: {}]   ;;  %s1623_s7 = inlined_call_operand.vmem [shape: f32[96,192], index: 7, kind: input, shape index: {}]   ;;  %s1624_s8 = inlined_call_operand.vmem [shape: f32[1,192], index: 8, kind: input, shape index: {}]   ;;  %s1625_s9 = inlined_call_operand.hbm [shape: f32[32,64], index: 9, kind: input, shape index: {}]   ;;  %s1626_s10 = inlined_call_operand.vmem [shape: f32[1,32], index: 10, kind: input, shape index: {}]   ;;  %s1627_s11 = inlined_call_operand.hbm [shape: f32[32,32], index: 11, kind: input, shape index: {}]   ;;  %s1628_s12 = inlined_call_operand.vmem [shape: f32[1,32], index: 12, kind: input, shape index: {}]   ;;  %s1629_s13 = inlined_call_operand.vmem [shape: f32[1,32], index: 13, kind: input, shape index: {}]   ;;  %s1630_s14 = inlined_call_operand.vmem [shape: f32[64,32], index: 14, kind: input, shape index: {}]   ;;  %s1631_s15 = inlined_call_operand.vmem [shape: f32[1,32], index: 15, kind: input, shape index: {}]   ;;  %s1632_s16 = inlined_call_operand.hbm [shape: f32[32,50], index: 16, kind: input, shape index: {}]   ;;  %s1633_s17 = inlined_call_operand.vmem [shape: f32[1,50], index: 17, kind: input, shape index: {}]   ;;  %s1634_s18 = inlined_call_operand.hbm [shape: f32[1,128], index: 18, kind: output, shape index: {}]  }
   0x1   :  { %1635 = sst [smem:[#allocation22_spill]] %s1616_s0 }
   0x2   :  { %1636 = sst [smem:[#allocation23_spill]] %s1617_s1 }
   0x3   :  { %1637 = sst [smem:[#allocation24_spill]] %s1618_s2 }
   0x4   :  { %25 = vsyncpa [#allocation7], 0 }
   0x5   :  { %26 = vsyncpa [#allocation10], 0 }
   0x6   :  { %27 = vsyncpa [#allocation13], 0 }
   0x7   :  { %28 = vsyncpa [#allocation8], 0  ;;  %s1256_s27 = smov [#allocation9]  }
   0x8   :  { %s53_s28 = sshll.u32 %s1256_s27, 4  ;;  %s54_s28 = int_to_ptr.vmem [resolvable:$true] %s53_s28 }
   0x9   :  { %s1134_s29 = scalar_lea.vmem %s54_s28, 128  ;;  %p1139_p1 = scmp.lt.s32.totalorder %s54_s28, %s54_s28 }
   0xa   :  { %p1135_p0 = scmp.ne.s32.totalorder %s54_s28, %s1134_s29  ;;  %p1140_p2 = scmp.lt.s32.totalorder %s1134_s29, %s1134_s29 }
   0xc   :  { %p1141_p3 = por %p1140_p2, %p1139_p1 }
   0xe   :  { %p1142_p4 = pnand %p1141_p3, %p1135_p0 }
  0x10   :  { %1145 = shalt.err (!%p1142_p4)
}
  0x11   :  { %56 = dma.hbm_to_vmem [thread:$0]  %s1622_s6, 128, %s54_s28, [#allocation10]  }
  0x12   :  { %s1257_s19 = smov [#allocation12]   ;;  %s1258_s20 = smov [#allocation6]  }
  0x13   :  { %s80_s1 = sshll.u32 %s1257_s19, 4  ;;  %s43_s21 = sshll.u32 %s1258_s20, 4  ;;  %s81_s1 = int_to_ptr.vmem [resolvable:$true] %s80_s1  ;;  %s44_s21 = int_to_ptr.vmem [resolvable:$true] %s43_s21 }
  0x14   :  { %s1154_s22 = scalar_lea.vmem %s81_s1, 512  ;;  %p1159_p6 = scmp.lt.s32.totalorder %s81_s1, %s81_s1 }
  0x15   :  { %p1155_p5 = scmp.ne.s32.totalorder %s81_s1, %s1154_s22  ;;  %p1160_p7 = scmp.lt.s32.totalorder %s1154_s22, %s1154_s22 }
  0x17   :  { %p1161_p8 = por %p1160_p7, %p1159_p6 }
  0x19   :  { %p1162_p9 = pnand %p1161_p8, %p1155_p5 }
  0x1b   :  { %1165 = shalt.err (!%p1162_p9)
}
  0x1c   :  { %s1259_s2 = smov 128   ;;  %s1260_s23 = smov 8  }
  0x1d   :  { %86 = dma.hbm_to_vmem [thread:$0]  %s1627_s11, 512, %s81_s1, [#allocation13], %s1259_s2, %s1259_s2, %s1260_s23  }
  0x1e   :  { %s1174_s6 = scalar_lea.vmem %s44_s21, 128  ;;  %p1179_p11 = scmp.lt.s32.totalorder %s44_s21, %s44_s21 }
  0x1f   :  { %p1175_p10 = scmp.ne.s32.totalorder %s44_s21, %s1174_s6  ;;  %p1180_p12 = scmp.lt.s32.totalorder %s1174_s6, %s1174_s6 }
  0x21   :  { %p1181_p13 = por %p1180_p12, %p1179_p11 }
  0x23   :  { %p1182_p0 = pnand %p1181_p13, %p1175_p10 }
  0x25   :  { %1185 = shalt.err (!%p1182_p0)
}
  0x26   :  { %46 = dma.hbm_to_vmem [thread:$0]  %s1621_s5, 128, %s44_s21, [#allocation7]  }
  0x27   :  { %s1261_s28 = smov [#allocation11]   ;;  %s1262_s30 = smov [#allocation14]  }
  0x28   :  { %s66_s29 = sshll.u32 %s1261_s28, 4  ;;  %s100_s0 = sshll.u32 %s1262_s30, 4  ;;  %s67_s29 = int_to_ptr.vmem [resolvable:$true] %s66_s29  ;;  %s101_s0 = int_to_ptr.vmem [resolvable:$true] %s100_s0 }
  0x29   :  { %s1194_s19 = scalar_lea.vmem %s67_s29, 512  ;;  %p1199_p2 = scmp.lt.s32.totalorder %s67_s29, %s67_s29 }
  0x2a   :  { %p1195_p1 = scmp.ne.s32.totalorder %s67_s29, %s1194_s19  ;;  %p1200_p3 = scmp.lt.s32.totalorder %s1194_s19, %s1194_s19 }
  0x2c   :  { %p1201_p4 = por %p1200_p3, %p1199_p2 }
  0x2e   :  { %p1202_p5 = pnand %p1201_p4, %p1195_p1 }
  0x30   :  { %1205 = shalt.err (!%p1202_p5)
}
  0x31   :  { %72 = dma.hbm_to_vmem [thread:$0]  %s1625_s9, 512, %s67_s29, [#allocation10], %s1259_s2, %s1259_s2, %s1260_s23  }
  0x32   :  { %s1214_s5 = scalar_lea.vmem %s101_s0, 512  ;;  %p1219_p7 = scmp.lt.s32.totalorder %s101_s0, %s101_s0 }
  0x33   :  { %p1215_p6 = scmp.ne.s32.totalorder %s101_s0, %s1214_s5  ;;  %p1220_p8 = scmp.lt.s32.totalorder %s1214_s5, %s1214_s5 }
  0x35   :  { %p1221_p9 = por %p1220_p8, %p1219_p7 }
  0x37   :  { %p1222_p10 = pnand %p1221_p9, %p1215_p6 }
  0x39   :  { %1225 = shalt.err (!%p1222_p10)
}
  0x3a   :  { %106 = dma.hbm_to_vmem [thread:$0]  %s1632_s16, 512, %s101_s0, [#allocation13], %s1259_s2, %s1259_s2, %s1260_s23  }
  0x3b   :  { %1246 = dma.done.wait [#allocation7], 128  }
  0x3c   :  { %1247 = vsyncadd [#allocation7], 4294967168 }
  0x3d   :  { %1248 = dma.done.wait [#allocation10], 640  }
  0x3e   :  { %1249 = vsyncadd [#allocation10], 4294966656 }
  0x3f   :  { %1250 = dma.done.wait [#allocation13], 1024  }
  0x40   :  { %1251 = vsyncadd [#allocation13], 4294966272  ;;  %s1638_s24 = sld [smem:[#allocation22_spill]] }
  0x41   :  { %s1639_s26 = sld [smem:[#allocation24_spill]] }
  0x47   :  { %s125_s27 = scalar_lea.vmem %s1639_s26, %s1638_s24 }
  0x48   :  { %v144_v0 = vld [vmem:[%s125_s27] sm:$0x1] }
  0x49   :  { %145 = vst [vmem:[#allocation2] sm:$0x1] %v144_v0 }
  0x4a   :  { %171 = vsyncadd [#allocation3], 16  ;;  %v1397_v1 = vld [vmem:[#allocation6] sm:$0xff]  ;;  %v1399_v2 = vld [vmem:[#allocation12] sm:$0xff] }
  0x4b   :  { %v1401_v3 = vld [vmem:[#allocation12 + $0x8] sm:$0xff]  ;;  %v1403_v4 = vld [vmem:[#allocation12 + $0x10] sm:$0xff]  ;;  %v1405_v5 = vld [vmem:[#allocation12 + $0x18] sm:$0xff] }
  0x4c   :  { %1252 = dma.done.wait [#allocation3], 16 }
  0x4d   :  { %1253 = vsyncadd [#allocation3], 4294967280  ;;  %v1263_v6 = vmov 0.0   ;;  %v976_v7 = vld [vmem:[%s1620_s4] ss:$0 sm:$0xff]  ;;  %v226_v8 = vld [vmem:[%s1623_s7 + $0xb8] sm:$0xff]  ;;  %v229_v38 = vlaneseq }
  0x4e   :  { %307 = vmatprep.mubr.f32.mxu0 %v1263_v6  ;;  %1016 = vmatprep.subr.mxu1 %v1263_v6  ;;  %s1264_s29 = smov 32   ;;  %v225_v9 = vld [vmem:[%s1623_s7 + $0xb0] sm:$0xff]  ;;  %v224_v10 = vld [vmem:[%s1623_s7 + $0xa8] sm:$0xff]  ;;  %v223_v11 = vld [vmem:[%s1623_s7 + $0xa0] sm:$0xff]  ;;  %s1265_s26 = smov 64   ;;  %vm199_vm0 = vcmask 261120  }
  0x4f   :  { %188 = vrot.lane.b32.xlu0 %v976_v7, %s1264_s29  ;;  %251 = vmatprep.subr.mxu0 %v226_v8  ;;  %v1428_v12 = vld [vmem:[%s1619_s3] ss:$0 sm:$0xff]  ;;  %v222_v13 = vld [vmem:[%s1623_s7 + $0x98] sm:$0xff]  ;;  %v221_v14 = vld [vmem:[%s1623_s7 + $0x90] sm:$0xff]  ;;  %vm201_vm1 = vcmask 523264   ;;  %vm239_vm2 = vcmask 785408  }
  0x50   :  { %252 = vmatpush1.msra.mxu0 %v225_v9  ;;  %v220_v15 = vld [vmem:[%s1623_s7 + $0x88] sm:$0xff]  ;;  %v219_v16 = vld [vmem:[%s1623_s7 + $0x80] sm:$0xff]  ;;  %v218_v17 = vld [vmem:[%s1623_s7 + $0x78] sm:$0xff]  ;;  %v1495_v39 = vshrl.u32 %v229_v38, 7  ;;  %s1266_s9 = smov 96   ;;  %vm1267_vm3 = vmmov 0  }
  0x51   :  { %253 = vmatprep.subr.mxu0 %v224_v10  ;;  %v217_v18 = vld [vmem:[%s1623_s7 + $0x70] sm:$0xff]  ;;  %v216_v19 = vld [vmem:[%s1623_s7 + $0x68] sm:$0xff]  ;;  %v215_v20 = vld [vmem:[%s1623_s7 + $0x60] sm:$0xff]  ;;  %1024 = vmatprep.mubr.msk.f32.mxu1 %vm1267_vm3, %v1263_v6  ;;  %vm439_vm4 = vcmask 253952   ;;  %vm650_vm5 = vcmask 57344   ;;  %vm468_vm9 = vcmask 64512  }
  0x52   :  { %254 = vmatpush1.msra.mxu0 %v223_v11  ;;  %v214_v21 = vld [vmem:[%s1623_s7 + $0x58] sm:$0xff]  ;;  %v213_v22 = vld [vmem:[%s1623_s7 + $0x50] sm:$0xff]  ;;  %v212_v23 = vld [vmem:[%s1623_s7 + $0x48] sm:$0xff]  ;;  %v1498_v40 = vsub.s32 0, %v1495_v39  ;;  %v235_v43 = vsub.s32 1, %v1495_v39  ;;  %vm911_vm11 = vcmask 401408  }
  0x53   :  { %196 = vrot.lane.b32.xlu0 %v1428_v12, %s1265_s26  ;;  %255 = vmatprep.subr.mxu0 %v222_v13  ;;  %v211_v24 = vld [vmem:[%s1623_s7 + $0x40] sm:$0xff]  ;;  %v210_v25 = vld [vmem:[%s1623_s7 + $0x38] sm:$0xff]  ;;  %v209_v26 = vld [vmem:[%s1623_s7 + $0x30] sm:$0xff]  ;;  %vm933_vm12 = vcmask 408576   ;;  %vm935_vm13 = vcmask 670720   ;;  %vm937_vm14 = vcmask 932864  }
  0x54   :  { %256 = vmatpush1.msra.mxu0 %v221_v14  ;;  %v208_v27 = vld [vmem:[%s1623_s7 + $0x28] sm:$0xff]  ;;  %v207_v28 = vld [vmem:[%s1623_s7 + $0x20] sm:$0xff]  ;;  %v206_v29 = vld [vmem:[%s1623_s7 + $0x18] sm:$0xff]  ;;  %vm939_vm15 = vcmask 998400  }
  0x55   :  { %257 = vmatprep.subr.mxu0 %v220_v15  ;;  %v205_v30 = vld [vmem:[%s1623_s7 + $0x10] sm:$0xff]  ;;  %v204_v31 = vld [vmem:[%s1623_s7 + $0x8] sm:$0xff]  ;;  %v203_v32 = vld [vmem:[%s1623_s7] sm:$0xff] }
  0x56   :  { %258 = vmatpush1.msra.mxu0 %v219_v16  ;;  %v180_v34 = vld [vmem:[#allocation2] sm:$0x1]  ;;  %v360_v60 = vld [vmem:[#allocation11 + $0x18] sm:$0xff]  ;;  %v359_v61 = vld [vmem:[#allocation11 + $0x10] sm:$0xff] }
  0x57   :  { %259 = vmatprep.subr.mxu0 %v218_v17  ;;  %v227_v41 = vld [vmem:[%s1624_s8] sm:$0x3]  ;;  %1017 = vmatpush3.msra.mxu1 %v360_v60  ;;  %v357_v63 = vld [vmem:[#allocation11] sm:$0xff] }
  0x58   :  { %260 = vmatpush1.msra.mxu0 %v217_v18  ;;  %v232_v42 = vrot.slane %v227_v41, %v1498_v40  ;;  %v236_v46 = vrot.slane %v227_v41, %v235_v43  ;;  %1018 = vmatprep.subr.mxu1 %v1263_v6  ;;  %v358_v62 = vld [vmem:[#allocation11 + $0x8] sm:$0xff] }
  0x59   :  { %261 = vmatprep.subr.mxu0 %v216_v19  ;;  %1019 = vmatpush3.msra.mxu1 %v359_v61 }
  0x5a   :  { %262 = vmatpush1.msra.mxu0 %v215_v20  ;;  %1020 = vmatprep.subr.mxu1 %v1263_v6 }
  0x5b   :  { %263 = vmatprep.subr.mxu0 %v214_v21  ;;  %1021 = vmatpush3.msra.mxu1 %v358_v62 }
  0x5c   :  { %264 = vmatpush1.msra.mxu0 %v213_v22  ;;  %1022 = vmatprep.subr.mxu1 %v1263_v6 }
  0x5d   :  { %265 = vmatprep.subr.mxu0 %v212_v23  ;;  %1023 = vmatpush3.msra.mxu1 %v357_v63 }
  0x5e   :  { %266 = vmatpush1.msra.mxu0 %v211_v24  ;;  %1027 = vmatprep.subr.mxu1 %v1263_v6 }
  0x5f   :  { %267 = vmatprep.subr.mxu0 %v210_v25  ;;  %v981_v25 = vld [vmem:[%s1628_s12] ss:$0 sm:$0xff] }
  0x60   :  { %268 = vmatpush1.msra.mxu0 %v209_v26 }
  0x61   :  { %269 = vmatprep.subr.mxu0 %v208_v27 }
  0x62   :  { %270 = vmatpush1.msra.mxu0 %v207_v28 }
  0x63   :  { %271 = vmatprep.subr.mxu0 %v206_v29 }
  0x64   :  { %272 = vmatpush1.msra.mxu0 %v205_v30  ;;  %v573_v30 = vld [vmem:[%s1629_s13] sm:$0x1]  ;;  %s1640_s13 = sld [smem:[#allocation23_spill]] }
  0x65   :  { %273 = vmatprep.subr.mxu0 %v204_v31 }
  0x66   :  { %274 = vmatpush1.msra.mxu0 %v203_v32 }
  0x67   :  { %1048 = vmatprep.subr.mxu0 %v1263_v6 }
  0xc1   :  { %v189_v33 = vpop.permute.xlu0 %188 }
  0xc2   :  { %v200_v35 = vsel %vm199_vm0, %v180_v34, %v189_v33 }
  0xc5   :  { %v197_v36 = vpop.permute.xlu0 %196 }
  0xc6   :  { %v202_v37 = vsel %vm201_vm1, %v200_v35, %v197_v36 }
  0xc7   :  { %978 = vmatmul.mubr.msk.f32.vlgmr.msra.gmra.mxu0 %vm239_vm2, %v202_v37 }
  0xc8   :  { %1064 = vmatprep.mubr.msk.f32.mxu0 %vm1267_vm3, %v1263_v6 }
 0x187   :  { %v309_v44 = vpop.f32.mrf.mxu0 }
 0x188   :  { %v310_v45 = vadd.f32 %v309_v44, %v232_v42 }
 0x189   :  { %v311_v47 = vpop.f32.mrf.mxu0 }
 0x18a   :  { %315 = vrot.lane.b32.xlu1 %v310_v45, %s1264_s29  ;;  %v312_v48 = vadd.f32 %v311_v47, %v236_v46  ;;  %v450_v47 = vstv %s1640_s13 }
 0x18e   :  { %336 = vrot.lane.b32.xlu1 %v312_v48, %s1266_s9 }
 0x192   :  { %326 = vrot.lane.b32.xlu1 %v312_v48, %s1264_s29 }
 0x196   :  { %352 = vrot.lane.b32.xlu1 %v1428_v12, %s1264_s29  ;;  %s1268_s29 = smov 18  }
 0x1fc   :  { %v316_v49 = vpop.permute.xlu1 %315 }
 0x1fd   :  { %v318_v50 = vadd.f32 %v316_v49, %v310_v45 }
 0x1ff   :  { %v319_v51 = vsub.f32 0.0, %v318_v50 }
 0x200   :  { %v337_v56 = vpop.permute.xlu1 %336 }
 0x201   :  { %v320_v52 = vmul.f32 1.442695, %v319_v51 }
 0x203   :  { %1096 = vpow2.f32 %v320_v52 }
 0x204   :  { %v327_v7 = vpop.permute.xlu1 %326 }
 0x205   :  { %v329_v8 = vadd.f32 %v327_v7, %v310_v45 }
 0x207   :  { %v330_v9 = vsub.f32 0.0, %v329_v8 }
 0x208   :  { %v353_v14 = vpop.permute.xlu1 %352 }
 0x209   :  { %v331_v10 = vmul.f32 1.442695, %v330_v9 }
 0x210   :  { %v1097_v53 = vpop.eup %1096 }
 0x211   :  { %v322_v54 = vadd.f32 1.0, %v1097_v53 }
 0x213   :  { %1098 = vrcp.f32 %v322_v54 }
 0x220   :  { %v1099_v55 = vpop.eup %1098 }
 0x221   :  { %v339_v57 = vmul.f32 %v1099_v55, %v337_v56  ;;  %v466_v56 = vld [vmem:[#allocation9] sm:$0xff] }
 0x223   :  { %341 = vrot.lane.b32.xlu0 %v339_v57, %s1265_s26  ;;  %s1270_s26 = smov 82  }
 0x295   :  { %v342_v58 = vpop.permute.xlu0 %341 }
 0x296   :  { %v344_v59 = vadd.f32 %v342_v58, %v310_v45 }
 0x298   :  { %1100 = vtanh.f32 %v344_v59 }
 0x299   :  { %1102 = vpow2.f32 %v331_v10 }
 0x2a5   :  { %v1101_v0 = vpop.eup %1100 }
 0x2a6   :  { %348 = vrot.lane.b32.xlu0 %v1101_v0, %s1266_s9  ;;  %v1103_v11 = vpop.eup %1102 }
 0x2a7   :  { %v333_v12 = vadd.f32 1.0, %v1103_v11 }
 0x2a9   :  { %1104 = vrcp.f32 %v333_v12 }
 0x2b6   :  { %v1105_v13 = vpop.eup %1104 }
 0x2b7   :  { %v346_v15 = vsub.f32 1.0, %v1105_v13  ;;  %v355_v17 = vmul.f32 %v1105_v13, %v353_v14 }
 0x318   :  { %v349_v16 = vpop.permute.xlu0 %348 }
 0x319   :  { %v351_v18 = vmul.f32 %v349_v16, %v346_v15 }
 0x31b   :  { %v1520_v19 = vadd.f32 %v355_v17, %v351_v18 }
 0x31d   :  { %362 = vrot.lane.b32.xlu0 %v1520_v19, %s1266_s9 }
 0x38f   :  { %v363_v20 = vpop.permute.xlu0 %362 }
 0x390   :  { %1025 = vmatmul.mubr.msk.f32.vlgmr.msra.gmra.mxu1 %vm199_vm0, %v363_v20  ;;  %v675_v20 = vld [vmem:[#allocation6] sm:$0xff] }
 0x391   :  { %1028 = vmatpush3.msra.mxu1 %v1405_v5  ;;  %1035 = vmatprep.mubr.msk.f32.mxu1 %vm1267_vm3, %v1263_v6 }
 0x392   :  { %1029 = vmatprep.subr.mxu1 %v1263_v6 }
 0x393   :  { %1030 = vmatpush3.msra.mxu1 %v1403_v4 }
 0x394   :  { %1031 = vmatprep.subr.mxu1 %v1263_v6 }
 0x395   :  { %1032 = vmatpush3.msra.mxu1 %v1401_v3 }
 0x396   :  { %1033 = vmatprep.subr.mxu1 %v1263_v6 }
 0x397   :  { %1034 = vmatpush3.msra.mxu1 %v1399_v2  ;;  %v437_v2 = vld [vmem:[%s1626_s10] sm:$0x1] }
 0x398   :  { %1036 = vmatmul.mubr.msk.f32.vlgmr.msra.gmra.mxu1 %vm199_vm0, %v1397_v1  ;;  %1038 = vmatprep.subr.mxu1 %v1263_v6 }
 0x399   :  { %1040 = vmatprep.mubr.msk.f32.mxu1 %vm1267_vm3, %v1263_v6 }
 0x450   :  { %v432_v5 = vpop.f32.mrf.mxu1 }
 0x451   :  { %v486_v21 = vrot.slane %v432_v5, %v1498_v40  ;;  %1106 = vtanh.f32 %v432_v5  ;;  %v757_v5 = vld [vmem:[%s1630_s14 + $0x38] sm:$0xff] }
 0x452   :  { %v1026_v4 = vpop.f32.mrf.mxu1  ;;  %1049 = vmatpush3.msra.mxu0 %v757_v5 }
 0x453   :  { %488 = vrot.lane.b32.xlu1 %v486_v21, %s1266_s9  ;;  %v756_v21 = vld [vmem:[%s1630_s14 + $0x30] sm:$0xff]  ;;  %1050 = vmatprep.subr.mxu0 %v1263_v6  ;;  %v755_v4 = vld [vmem:[%s1630_s14 + $0x28] sm:$0xff] }
 0x454   :  { %1051 = vmatpush3.msra.mxu0 %v756_v21 }
 0x455   :  { %1052 = vmatprep.subr.mxu0 %v1263_v6 }
 0x456   :  { %1053 = vmatpush3.msra.mxu0 %v755_v4 }
 0x457   :  { %1054 = vmatprep.subr.mxu0 %v1263_v6 }
 0x458   :  { %v560_v22 = vpop.f32.mrf.mxu1 }
 0x45a   :  { %v1037_v3 = vpop.f32.mrf.mxu1 }
 0x45b   :  { %v753_v3 = vld [vmem:[%s1630_s14 + $0x18] sm:$0xff] }
 0x45e   :  { %v1107_v23 = vpop.eup %1106 }
 0x45f   :  { %v438_v1 = vmul.f32 %v1107_v23, %v437_v2  ;;  %v752_v23 = vld [vmem:[%s1630_s14 + $0x10] sm:$0xff]  ;;  %v751_v2 = vld [vmem:[%s1630_s14 + $0x8] sm:$0xff] }
 0x461   :  { %v440_v24 = vsel %vm439_vm4, %v438_v1, 0.0 }
 0x477   :  { %441 = vadd.xlane.f32.xlu1 %v440_v24 }
 0x4c5   :  { %v489_v26 = vpop.permute.xlu1 %488 }
 0x4c6   :  { %v561_v27 = vadd.f32 %v560_v22, %v489_v26  ;;  %v754_v22 = vld [vmem:[%s1630_s14 + $0x20] sm:$0xff] }
 0x4c7   :  { %1055 = vmatpush3.msra.mxu0 %v754_v22 }
 0x4c8   :  { %v571_v28 = vadd.f32 %v981_v25, %v561_v27  ;;  %1056 = vmatprep.subr.mxu0 %v1263_v6 }
 0x4c9   :  { %1057 = vmatpush3.msra.mxu0 %v753_v3 }
 0x4ca   :  { %v572_v29 = vmax.f32 %v571_v28, 0.0  ;;  %1058 = vmatprep.subr.mxu0 %v1263_v6 }
 0x4cb   :  { %1059 = vmatpush3.msra.mxu0 %v752_v23 }
 0x4cc   :  { %1039 = vmatpush3.xpose.msk.msra.mxu1 %vm199_vm0, %v572_v29  ;;  %1060 = vmatprep.subr.mxu0 %v1263_v6 }
 0x4cd   :  { %1043 = vmatprep.subr.mxu1 %v1263_v6  ;;  %1061 = vmatpush3.msra.mxu0 %v751_v2 }
 0x4ce   :  { %1062 = vmatprep.subr.mxu0 %v1263_v6 }
 0x4cf   :  { %1041 = vmatmul.mubr.msk.f32.vlgmr.msra.gmra.mxu1 %vm199_vm0, %v573_v30  ;;  %v750_v30 = vld [vmem:[%s1630_s14] sm:$0xff] }
 0x4d0   :  { %1045 = vmatprep.mubr.msk.f32.mxu1 %vm1267_vm3, %v1263_v6  ;;  %1044 = vmatpush3.msra.mxu1 %v675_v20 }
 0x4d1   :  { %1067 = vmatprep.subr.mxu1 %v1263_v6  ;;  %1063 = vmatpush3.msra.mxu0 %v750_v30 }
 0x500   :  { %v442_v41 = vpop.xlane.xlu1 %441 }
 0x501   :  { %v443_v42 = vsub.f32 0.0, %v442_v41 }
 0x503   :  { %v444_v43 = vmul.f32 1.442695, %v443_v42 }
 0x58f   :  { %v646_v31 = vpop.f32.mrf.mxu1 }
 0x590   :  { %v651_v32 = vsel %vm650_vm5, %v646_v31, -inf }
 0x591   :  { %652 = vmax.xlane.f32.xlu0 %v651_v32  ;;  %v1042_v33 = vpop.f32.mrf.mxu1 }
 0x61a   :  { %v653_v34 = vpop.xlane.xlu0 %652 }
 0x61b   :  { %v654_v35 = vsub.f32 %v646_v31, %v653_v34  ;;  %v836_v34 = vld [vmem:[#allocation14 + $0x18] sm:$0xff] }
 0x61d   :  { %v655_v36 = vmul.f32 1.442695, %v654_v35  ;;  %v835_v35 = vld [vmem:[#allocation14 + $0x10] sm:$0xff] }
 0x61f   :  { %1108 = vpow2.f32 %v655_v36  ;;  %v834_v36 = vld [vmem:[#allocation14 + $0x8] sm:$0xff] }
 0x620   :  { %1110 = vpow2.f32 %v444_v43 }
 0x62c   :  { %v1109_v37 = vpop.eup %1108 }
 0x62d   :  { %v657_v38 = vsel %vm650_vm5, %v1109_v37, 0.0  ;;  %v1111_v44 = vpop.eup %1110 }
 0x62e   :  { %658 = vadd.xlane.f32.xlu0 %v657_v38  ;;  %v446_v45 = vadd.f32 1.0, %v1111_v44  ;;  %v758_v38 = vld [vmem:[%s1631_s15] sm:$0x1]  ;;  %s1269_s15 = smov 114  }
 0x630   :  { %1112 = vrcp.f32 %v446_v45  ;;  %v837_v45 = vld [vmem:[%s1633_s17] sm:$0x1]  ;;  %s1271_s17 = smov [#allocation15]  }
 0x631   :  { %s948_s22 = sshll.u32 %s1271_s17, 4  ;;  %s949_s22 = int_to_ptr.vmem [resolvable:$true] %s948_s22 }
 0x632   :  { %s1226_s24 = scalar_lea.vmem %s949_s22, 16  ;;  %s1230_s25 = scalar_lea.vmem %s949_s22, 32 }
 0x633   :  { %p1227_p11 = scmp.ne.s32.totalorder %s949_s22, %s1226_s24  ;;  %p1231_p12 = scmp.lt.s32.totalorder %s949_s22, %s949_s22 }
 0x634   :  { %p1232_p13 = scmp.lt.s32.totalorder %s1230_s25, %s1226_s24 }
 0x636   :  { %p1233_p0 = por %p1232_p13, %p1231_p12 }
 0x638   :  { %p1234_p1 = pnand %p1233_p0, %p1227_p11 }
 0x63d   :  { %v1113_v46 = vpop.eup %1112 }
 0x63e   :  { %v451_v48 = vmul.f32 %v1113_v46, %v450_v47 }
 0x640   :  { %v452_v49 = vadd.f32 0.5, %v451_v48 }
 0x642   :  { %v453_v50 = vfloor.f32 %v452_v49 }
 0x644   :  { %v1078_v51 = vtrunc.f32 %v453_v50 }
 0x646   :  { %v1079_v52 = vcvt.f32.s32 %v1078_v51 }
 0x648   :  { %vm455_vm6 = vcmp.gt.s32.totalorder %v1079_v52, 0 }
 0x649   :  { %v456_v53 = vsel %vm455_vm6, %v1079_v52, 0 }
 0x64a   :  { %vm457_vm7 = vcmp.lt.s32.totalorder %v456_v53, 7 }
 0x64b   :  { %v458_v54 = vsel %vm457_vm7, %v456_v53, 7 }
 0x64c   :  { %v464_v55 = vrot.slane %v458_v54, %v1498_v40 }
 0x64e   :  { %vm465_vm8 = vcmp.eq.s32.totalorder %v1495_v39, %v464_v55 }
 0x64f   :  { %v467_v57 = vsel %vm465_vm8, %v466_v56, 0.0 }
 0x650   :  { %v469_v58 = vsel %vm468_vm9, %v467_v57, 0.0 }
 0x651   :  { %v470_v59 = vrot.slane %v469_v58, 4 }
 0x653   :  { %v471_v60 = vadd.f32 %v470_v59, %v469_v58 }
 0x655   :  { %v472_v61 = vrot.slane %v471_v60, 2 }
 0x657   :  { %v473_v62 = vadd.f32 %v472_v61, %v471_v60 }
 0x659   :  { %v474_v63 = vrot.slane %v473_v62, 1 }
 0x65b   :  { %v475_v0 = vadd.f32 %v474_v63, %v473_v62 }
 0x65d   :  { %v477_v7 = vmul.f32 %v475_v0, %v475_v0  ;;  %vm476_vm10 = vcmp.gt.f32.partialorder %v475_v0, 4.0 }
 0x65f   :  { %v478_v8 = vsub.f32 0.0, %v477_v7 }
 0x661   :  { %v479_v9 = vmul.f32 0.125, %v478_v8 }
 0x663   :  { %v480_v11 = vmul.f32 1.442695, %v479_v9 }
 0x6b7   :  { %v659_v10 = vpop.xlane.xlu0 %658 }
 0x6b8   :  { %1114 = vrcp.f32 %v659_v10 }
 0x6b9   :  { %1116 = vpow2.f32 %v480_v11 }
 0x6c5   :  { %v1115_v40 = vpop.eup %1114 }
 0x6c6   :  { %v661_v39 = vmul.f32 %v1115_v40, %v659_v10  ;;  %v1117_v13 = vpop.eup %1116 }
 0x6c7   :  { %v482_v16 = vsel %vm476_vm10, 0.0, %v1117_v13 }
 0x6c8   :  { %v662_v12 = vsub.f32 2.0, %v661_v39 }
 0x6ca   :  { %v663_v14 = vmul.f32 %v1115_v40, %v662_v12 }
 0x6cc   :  { %v664_v15 = vmul.f32 %v1109_v37, %v663_v14  ;;  %v833_v37 = vld [vmem:[#allocation14] sm:$0xff] }
 0x6ce   :  { %v665_v17 = vmul.f32 %v664_v15, %v482_v16 }
 0x6d0   :  { %v666_v18 = vsel %vm650_vm5, %v665_v17, 0.0 }
 0x6d1   :  { %667 = vadd.xlane.f32.xlu0 %v666_v18 }
 0x75a   :  { %v668_v1 = vpop.xlane.xlu0 %667 }
 0x75b   :  { %v669_v24 = vadd.f32 1e-30, %v668_v1 }
 0x75d   :  { %1118 = vrcp.f32 %v669_v24 }
 0x76a   :  { %v1119_v25 = vpop.eup %1118 }
 0x76b   :  { %v671_v26 = vmul.f32 %v1119_v25, %v669_v24 }
 0x76d   :  { %v672_v27 = vsub.f32 2.0, %v671_v26 }
 0x76f   :  { %v673_v28 = vmul.f32 %v1119_v25, %v672_v27 }
 0x771   :  { %v674_v29 = vmul.f32 %v673_v28, %v665_v17 }
 0x773   :  { %1046 = vmatmul.mubr.msk.f32.vlgmr.msra.gmra.mxu1 %vm468_vm9, %v674_v29 }
 0x774   :  { %1075 = vmatprep.mubr.msk.f32.mxu1 %vm1267_vm3, %v1263_v6  ;;  %1068 = vmatpush3.msra.mxu1 %v836_v34 }
 0x775   :  { %1069 = vmatprep.subr.mxu1 %v1263_v6 }
 0x776   :  { %1070 = vmatpush3.msra.mxu1 %v835_v35 }
 0x777   :  { %1071 = vmatprep.subr.mxu1 %v1263_v6 }
 0x778   :  { %1072 = vmatpush3.msra.mxu1 %v834_v36 }
 0x779   :  { %1073 = vmatprep.subr.mxu1 %v1263_v6 }
 0x77a   :  { %1074 = vmatpush3.msra.mxu1 %v833_v37 }
 0x833   :  { %v745_v31 = vpop.f32.mrf.mxu1 }
 0x834   :  { %v749_v32 = vsel %vm199_vm0, %v745_v31, %v1520_v19 }
 0x835   :  { %v1047_v33 = vpop.f32.mrf.mxu1  ;;  %1065 = vmatmul.mubr.msk.f32.vlgmr.msra.gmra.mxu0 %vm201_vm1, %v749_v32 }
 0x8f5   :  { %v828_v41 = vpop.f32.mrf.mxu0 }
 0x8f6   :  { %v829_v42 = vadd.f32 %v828_v41, %v758_v38 }
 0x8f7   :  { %v1066_v43 = vpop.f32.mrf.mxu0 }
 0x8f8   :  { %1120 = vtanh.f32 %v829_v42 }
 0x905   :  { %v1121_v44 = vpop.eup %1120 }
 0x906   :  { %1076 = vmatmul.mubr.msk.f32.vlgmr.msra.gmra.mxu1 %vm199_vm0, %v1121_v44 }
 0x9c6   :  { %v907_v46 = vpop.f32.mrf.mxu1 }
 0x9c7   :  { %v908_v47 = vadd.f32 %v907_v46, %v837_v45 }
 0x9c8   :  { %v1077_v6 = vpop.f32.mrf.mxu1 }
 0x9c9   :  { %v912_v48 = vsel %vm911_vm11, %v908_v47, -inf }
 0x9ca   :  { %913 = vmax.xlane.f32.xlu1 %v912_v48 }
 0x9db   :  { %924 = vrot.lane.b32.xlu1 %v1520_v19, %s1268_s29 }
 0x9df   :  { %930 = vrot.lane.b32.xlu1 %v674_v29, %s1269_s15 }
 0xa53   :  { %v914_v49 = vpop.xlane.xlu1 %913 }
 0xa54   :  { %v915_v50 = vsub.f32 %v908_v47, %v914_v49 }
 0xa56   :  { %v916_v51 = vmul.f32 1.442695, %v915_v50 }
 0xa57   :  { %v925_v56 = vpop.permute.xlu1 %924 }
 0xa58   :  { %1122 = vpow2.f32 %v916_v51 }
 0xa5b   :  { %v931_v60 = vpop.permute.xlu1 %930 }
 0xa65   :  { %v1123_v52 = vpop.eup %1122 }
 0xa66   :  { %v918_v53 = vsel %vm911_vm11, %v1123_v52, 0.0 }
 0xa67   :  { %919 = vadd.xlane.f32.xlu0 %v918_v53 }
 0xa7d   :  { %927 = vrot.lane.b32.xlu0 %v1121_v44, %s1270_s26 }
 0xaf0   :  { %v920_v54 = vpop.xlane.xlu0 %919 }
 0xaf1   :  { %1124 = vlog2.f32 %v920_v54 }
 0xaf4   :  { %v928_v19 = vpop.permute.xlu0 %927 }
 0xafe   :  { %v1125_v55 = vpop.eup %1124 }
 0xaff   :  { %v922_v57 = vmul.f32 0.6931472, %v1125_v55 }
 0xb01   :  { %v923_v58 = vsub.f32 %v915_v50, %v922_v57 }
 0xb03   :  { %v934_v59 = vsel %vm933_vm12, %v923_v58, %v925_v56 }
 0xb04   :  { %v936_v61 = vsel %vm935_vm13, %v934_v59, %v928_v19 }
 0xb05   :  { %v938_v62 = vsel %vm937_vm14, %v936_v61, %v931_v60 }
 0xb06   :  { %v940_v63 = vsel %vm939_vm15, %v938_v62, 0.0 }
 0xb07   :  { %941 = vst [vmem:[#allocation15] sm:$0x1] %v940_v63 }
 0xb08   :  { %1237 = shalt.err (!%p1234_p1)
}
 0xb09   :  { %951 = dma.vmem_to_hbm [thread:$0]  %s949_s22, 16, %s1634_s18, [#allocation8]  }
 0xb0a   :  { %1254 = dma.done.wait [#allocation8], 16  }
 0xb0b   :  { %1255 = vsyncadd [#allocation8], 4294967280 }
 0xb0c   :  { %955 = vsyncpa [#allocation7], 1 }
 0xb0d   :  { %956 = vsyncpa [#allocation10], 1 }
 0xb0e   :  { %957 = vsyncpa [#allocation13], 1 }
 0xb0f   :  { %958 = vsyncpa [#allocation8], 1 }
 0xb10   :  { %959 = vsyncmov [#allocation3] }
 0xb13   :  { %s960_s13 = vpop.sfrf %959 }
 0xb14   :  { %p987_p2 = scmp.ne.s32.totalorder %s960_s13, 0 }
 0xb16   :  { %964 = shalt.err (%p987_p2)  }

</bundles_post_ra>
